<compile_context>
chip_gen: v7x
topology: tpu7x:2x2x1
jax: 0.10.0
libtpu: 0.0.40
codegen_flags: <defaults>
</compile_context>

<pallas_src>
import jax
import jax.numpy as jnp
from jax.experimental import pallas as pl
from jax.experimental.pallas import tpu as pltpu


def _two_carts_kernel(a_ref, b_ref, c_ref, x_ref, u_ref, dx_ref, y_ref):
    # Shapes (per grid tile):
    #   a_ref, c_ref : (16, TB)  rows ordered as 4*i + j  <->  M[b, i, j]
    #   b_ref        : (4,  TB)
    #   x_ref        : (4,  TB)
    #   u_ref        : (1,  TB)
    #   dx_ref,y_ref : (4,  TB)
    x0 = x_ref[0, :]
    x1 = x_ref[1, :]
    x2 = x_ref[2, :]
    x3 = x_ref[3, :]
    u0 = u_ref[0, :]

    for i in range(4):  # static unroll: pure VPU MACs, lane-dense vregs
        acc = a_ref[4 * i + 0, :] * x0
        acc = acc + a_ref[4 * i + 1, :] * x1
        acc = acc + a_ref[4 * i + 2, :] * x2
        acc = acc + a_ref[4 * i + 3, :] * x3
        dx_ref[i, :] = acc + b_ref[i, :] * u0

        accy = c_ref[4 * i + 0, :] * x0
        accy = accy + c_ref[4 * i + 1, :] * x1
        accy = accy + c_ref[4 * i + 2, :] * x2
        accy = accy + c_ref[4 * i + 3, :] * x3
        y_ref[i, :] = accy


def _ceil_to(n, m):
    return ((n + m - 1) // m) * m


def two_carts_forward(mat_a, mat_b, mat_c, x, u, *, tile_b=8192):
    """Batched dx = A@x + B@u ; y = C@x.   Inputs are batch-major like torch."""
    B = x.shape[0]
    f32 = jnp.float32

    # Relayout to batch-last (lane-dense). (B,4,4) -> (4,4,B) -> (16,B), etc.
    a_t = jnp.transpose(mat_a.astype(f32), (1, 2, 0)).reshape(16, B)
    c_t = jnp.transpose(mat_c.astype(f32), (1, 2, 0)).reshape(16, B)
    b_t = jnp.transpose(mat_b.astype(f32), (1, 2, 0)).reshape(4, B)
    x_t = x.astype(f32).T                      # (4, B)
    u_t = u.astype(f32).T                      # (1, B)

    # Batch tile: multiple of 128 lanes; sweepable via tile_b.
    tb = min(_ceil_to(max(tile_b, 128), 128), _ceil_to(B, 128))
    bp = _ceil_to(B, tb)
    if bp != B:
        pad = bp - B
        padfn = lambda z: jnp.pad(z, ((0, 0), (0, pad)))
        a_t, b_t, c_t, x_t, u_t = map(padfn, (a_t, b_t, c_t, x_t, u_t))

    spec = lambda rows: pl.BlockSpec((rows, tb), lambda i: (0, i))

    dx_t, y_t = pl.pallas_call(
        _two_carts_kernel,
        grid=(bp // tb,),
        in_specs=[
            spec(16),   # A   (16, bp)
            spec(4),    # B   (4,  bp)
            spec(16),   # C   (16, bp)
            spec(4),    # x   (4,  bp)
            spec(1),    # u   (1,  bp)
        ],
        out_specs=[
            spec(4),    # dx
            spec(4),    # y
        ],
        out_shape=(
            jax.ShapeDtypeStruct((4, bp), f32),
            jax.ShapeDtypeStruct((4, bp), f32),
        ),
        compiler_params=pltpu.CompilerParams(
            dimension_semantics=("parallel",)),
    )(a_t, b_t, c_t, x_t, u_t)

    # Back to batch-major (B, 4), trimming any batch padding.
    return dx_t[:, :B].T, y_t[:, :B].T


def make_two_carts_params(batch_size, spring_k, mass_1, mass_2,
                          spring_k_noise=0.0, mass_1_noise=0.0,
                          mass_2_noise=0.0, key=None):
    """Deterministic re-implementation of TwoCarts.new_system()."""
    if key is None:
        key = jax.random.PRNGKey(0)
    k1, k2, k3 = jax.random.split(key, 3)

    def rnd(k, shape):
        return 2.0 * jax.random.uniform(k, shape, dtype=jnp.float32) - 1.0

    spring_k = spring_k * (1.0 + spring_k_noise * rnd(k1, (batch_size,)))
    mass_1 = mass_1 * (1.0 + mass_1_noise * rnd(k2, (batch_size,)))
    _ = mass_2 * (1.0 + mass_2_noise * rnd(k3, (batch_size,)))  # unused in ref

    mat_a = jnp.zeros((batch_size, 4, 4), jnp.float32)
    mat_b = jnp.zeros((batch_size, 4, 1), jnp.float32)

    mat_a = mat_a.at[:, 0, 1].set(1.0)
    mat_a = mat_a.at[:, 1, 0].set(-(spring_k / mass_1))
    mat_a = mat_a.at[:, 1, 2].set(spring_k / mass_1)
    mat_b = mat_b.at[:, 1, 0].set(1.0 / mass_1)
    mat_c = jnp.broadcast_to(jnp.eye(4, dtype=jnp.float32),
                             (batch_size, 4, 4))
    return mat_a, mat_b, jnp.asarray(mat_c)


def _reference(mat_a, mat_b, mat_c, x, u):
    dx = (jnp.einsum("bij,bj->bi", mat_a, x)
          + jnp.einsum("bij,bj->bi", mat_b, u))
    y = jnp.einsum("bij,bj->bi", mat_c, x)
    return dx, y


if __name__ == "__main__":
    key = jax.random.PRNGKey(0)

    # --- primary small-shape check (batch=2, state=4, input=1) ---
    batch = 2
    kp, kx, ku = jax.random.split(key, 3)
    mat_a, mat_b, mat_c = make_two_carts_params(
        batch_size=batch, spring_k=1.0, mass_1=1.0, mass_2=2.0,
        spring_k_noise=0.1, mass_1_noise=0.1, mass_2_noise=0.1, key=kp)
    x = jax.random.normal(kx, (batch, 4), dtype=jnp.float32)
    u = jax.random.normal(ku, (batch, 1), dtype=jnp.float32)

    dx, y = two_carts_forward(mat_a, mat_b, mat_c, x, u)
    jax.block_until_ready((dx, y))
    dx_ref, y_ref = _reference(mat_a, mat_b, mat_c, x, u)
    assert jnp.allclose(dx, dx_ref, atol=1e-5), (dx, dx_ref)
    assert jnp.allclose(y, y_ref, atol=1e-5), (y, y_ref)

    # --- multi-tile grid path (padding + pipelined grid) sanity check ---
    batch2 = 300
    kp2, kx2, ku2 = jax.random.split(jax.random.PRNGKey(1), 3)
    a2, b2, c2 = make_two_carts_params(
        batch_size=batch2, spring_k=1.0, mass_1=1.0, mass_2=2.0,
        spring_k_noise=0.1, mass_1_noise=0.1, mass_2_noise=0.1, key=kp2)
    x2 = jax.random.normal(kx2, (batch2, 4), dtype=jnp.float32)
    u2 = jax.random.normal(ku2, (batch2, 1), dtype=jnp.float32)

    dx2, y2 = two_carts_forward(a2, b2, c2, x2, u2, tile_b=128)
    jax.block_until_ready((dx2, y2))
    dx2_ref, y2_ref = _reference(a2, b2, c2, x2, u2)
    assert jnp.allclose(dx2, dx2_ref, atol=1e-5)
    assert jnp.allclose(y2, y2_ref, atol=1e-5)

    print("KERNEL_OK")
</pallas_src>

<mosaic_0001>
module attributes {stable_mosaic.version = 11 : i64} {
  func.func @_two_carts_kernel(%arg0: i32, %arg1: memref<16x128xf32, #tpu.memory_space<vmem>>, %arg2: memref<4x128xf32, #tpu.memory_space<vmem>>, %arg3: memref<16x128xf32, #tpu.memory_space<vmem>>, %arg4: memref<4x128xf32, #tpu.memory_space<vmem>>, %arg5: memref<1x128xf32, #tpu.memory_space<vmem>>, %arg6: memref<4x128xf32, #tpu.memory_space<vmem>>, %arg7: memref<4x128xf32, #tpu.memory_space<vmem>>) attributes {dimension_semantics = [#tpu.dimension_semantics<parallel>], iteration_bounds = array<i64: 1>, scalar_prefetch = 0 : i64, scratch_operands = 0 : i64, tpu.core_type = #tpu.core_type<tc>, window_params = [{transform_indices = @transform_0, window_bounds = array<i64: 16, 128>}, {transform_indices = @transform_1, window_bounds = array<i64: 4, 128>}, {transform_indices = @transform_2, window_bounds = array<i64: 16, 128>}, {transform_indices = @transform_3, window_bounds = array<i64: 4, 128>}, {transform_indices = @transform_4, window_bounds = array<i64: 1, 128>}, {transform_indices = @transform_5, window_bounds = array<i64: 4, 128>}, {transform_indices = @transform_6, window_bounds = array<i64: 4, 128>}]} {
    %c0 = arith.constant 0 : index
    %c0_0 = arith.constant 0 : index
    %0 = vector.load %arg4[%c0, %c0_0] : memref<4x128xf32, #tpu.memory_space<vmem>>, vector<1x128xf32>
    %1 = vector.shape_cast %0 : vector<1x128xf32> to vector<128xf32>
    %c1 = arith.constant 1 : index
    %c0_1 = arith.constant 0 : index
    %2 = vector.load %arg4[%c1, %c0_1] : memref<4x128xf32, #tpu.memory_space<vmem>>, vector<1x128xf32>
    %3 = vector.shape_cast %2 : vector<1x128xf32> to vector<128xf32>
    %c2 = arith.constant 2 : index
    %c0_2 = arith.constant 0 : index
    %4 = vector.load %arg4[%c2, %c0_2] : memref<4x128xf32, #tpu.memory_space<vmem>>, vector<1x128xf32>
    %5 = vector.shape_cast %4 : vector<1x128xf32> to vector<128xf32>
    %c3 = arith.constant 3 : index
    %c0_3 = arith.constant 0 : index
    %6 = vector.load %arg4[%c3, %c0_3] : memref<4x128xf32, #tpu.memory_space<vmem>>, vector<1x128xf32>
    %7 = vector.shape_cast %6 : vector<1x128xf32> to vector<128xf32>
    %c0_4 = arith.constant 0 : index
    %c0_5 = arith.constant 0 : index
    %8 = vector.load %arg5[%c0_4, %c0_5] : memref<1x128xf32, #tpu.memory_space<vmem>>, vector<1x128xf32>
    %9 = vector.shape_cast %8 : vector<1x128xf32> to vector<128xf32>
    %c0_6 = arith.constant 0 : index
    %c0_7 = arith.constant 0 : index
    %10 = vector.load %arg1[%c0_6, %c0_7] : memref<16x128xf32, #tpu.memory_space<vmem>>, vector<1x128xf32>
    %11 = vector.shape_cast %10 : vector<1x128xf32> to vector<128xf32>
    %12 = arith.mulf %11, %1 : vector<128xf32>
    %c1_8 = arith.constant 1 : index
    %c0_9 = arith.constant 0 : index
    %13 = vector.load %arg1[%c1_8, %c0_9] : memref<16x128xf32, #tpu.memory_space<vmem>>, vector<1x128xf32>
    %14 = vector.shape_cast %13 : vector<1x128xf32> to vector<128xf32>
    %15 = arith.mulf %14, %3 : vector<128xf32>
    %16 = arith.addf %12, %15 : vector<128xf32>
    %c2_10 = arith.constant 2 : index
    %c0_11 = arith.constant 0 : index
    %17 = vector.load %arg1[%c2_10, %c0_11] : memref<16x128xf32, #tpu.memory_space<vmem>>, vector<1x128xf32>
    %18 = vector.shape_cast %17 : vector<1x128xf32> to vector<128xf32>
    %19 = arith.mulf %18, %5 : vector<128xf32>
    %20 = arith.addf %16, %19 : vector<128xf32>
    %c3_12 = arith.constant 3 : index
    %c0_13 = arith.constant 0 : index
    %21 = vector.load %arg1[%c3_12, %c0_13] : memref<16x128xf32, #tpu.memory_space<vmem>>, vector<1x128xf32>
    %22 = vector.shape_cast %21 : vector<1x128xf32> to vector<128xf32>
    %23 = arith.mulf %22, %7 : vector<128xf32>
    %24 = arith.addf %20, %23 : vector<128xf32>
    %c0_14 = arith.constant 0 : index
    %c0_15 = arith.constant 0 : index
    %25 = vector.load %arg2[%c0_14, %c0_15] : memref<4x128xf32, #tpu.memory_space<vmem>>, vector<1x128xf32>
    %26 = vector.shape_cast %25 : vector<1x128xf32> to vector<128xf32>
    %27 = arith.mulf %26, %9 : vector<128xf32>
    %28 = arith.addf %24, %27 : vector<128xf32>
    %c0_16 = arith.constant 0 : index
    %c0_17 = arith.constant 0 : index
    %29 = vector.load %arg6[%c0_16, %c0_17] : memref<4x128xf32, #tpu.memory_space<vmem>>, vector<1x128xf32>
    %30 = vector.shape_cast %29 : vector<1x128xf32> to vector<128xf32>
    %31 = vector.shape_cast %28 : vector<128xf32> to vector<1x128xf32>
    tpu.vector_store %arg6[%c0_16, %c0_17], %31 {strides = array<i32>} : memref<4x128xf32, #tpu.memory_space<vmem>>, vector<1x128xf32>,
    %c0_18 = arith.constant 0 : index
    %c0_19 = arith.constant 0 : index
    %32 = vector.load %arg3[%c0_18, %c0_19] : memref<16x128xf32, #tpu.memory_space<vmem>>, vector<1x128xf32>
    %33 = vector.shape_cast %32 : vector<1x128xf32> to vector<128xf32>
    %34 = arith.mulf %33, %1 : vector<128xf32>
    %c1_20 = arith.constant 1 : index
    %c0_21 = arith.constant 0 : index
    %35 = vector.load %arg3[%c1_20, %c0_21] : memref<16x128xf32, #tpu.memory_space<vmem>>, vector<1x128xf32>
    %36 = vector.shape_cast %35 : vector<1x128xf32> to vector<128xf32>
    %37 = arith.mulf %36, %3 : vector<128xf32>
    %38 = arith.addf %34, %37 : vector<128xf32>
    %c2_22 = arith.constant 2 : index
    %c0_23 = arith.constant 0 : index
    %39 = vector.load %arg3[%c2_22, %c0_23] : memref<16x128xf32, #tpu.memory_space<vmem>>, vector<1x128xf32>
    %40 = vector.shape_cast %39 : vector<1x128xf32> to vector<128xf32>
    %41 = arith.mulf %40, %5 : vector<128xf32>
    %42 = arith.addf %38, %41 : vector<128xf32>
    %c3_24 = arith.constant 3 : index
    %c0_25 = arith.constant 0 : index
    %43 = vector.load %arg3[%c3_24, %c0_25] : memref<16x128xf32, #tpu.memory_space<vmem>>, vector<1x128xf32>
    %44 = vector.shape_cast %43 : vector<1x128xf32> to vector<128xf32>
    %45 = arith.mulf %44, %7 : vector<128xf32>
    %46 = arith.addf %42, %45 : vector<128xf32>
    %c0_26 = arith.constant 0 : index
    %c0_27 = arith.constant 0 : index
    %47 = vector.load %arg7[%c0_26, %c0_27] : memref<4x128xf32, #tpu.memory_space<vmem>>, vector<1x128xf32>
    %48 = vector.shape_cast %47 : vector<1x128xf32> to vector<128xf32>
    %49 = vector.shape_cast %46 : vector<128xf32> to vector<1x128xf32>
    tpu.vector_store %arg7[%c0_26, %c0_27], %49 {strides = array<i32>} : memref<4x128xf32, #tpu.memory_space<vmem>>, vector<1x128xf32>,
    %c4 = arith.constant 4 : index
    %c0_28 = arith.constant 0 : index
    %50 = vector.load %arg1[%c4, %c0_28] : memref<16x128xf32, #tpu.memory_space<vmem>>, vector<1x128xf32>
    %51 = vector.shape_cast %50 : vector<1x128xf32> to vector<128xf32>
    %52 = arith.mulf %51, %1 : vector<128xf32>
    %c5 = arith.constant 5 : index
    %c0_29 = arith.constant 0 : index
    %53 = vector.load %arg1[%c5, %c0_29] : memref<16x128xf32, #tpu.memory_space<vmem>>, vector<1x128xf32>
    %54 = vector.shape_cast %53 : vector<1x128xf32> to vector<128xf32>
    %55 = arith.mulf %54, %3 : vector<128xf32>
    %56 = arith.addf %52, %55 : vector<128xf32>
    %c6 = arith.constant 6 : index
    %c0_30 = arith.constant 0 : index
    %57 = vector.load %arg1[%c6, %c0_30] : memref<16x128xf32, #tpu.memory_space<vmem>>, vector<1x128xf32>
    %58 = vector.shape_cast %57 : vector<1x128xf32> to vector<128xf32>
    %59 = arith.mulf %58, %5 : vector<128xf32>
    %60 = arith.addf %56, %59 : vector<128xf32>
    %c7 = arith.constant 7 : index
    %c0_31 = arith.constant 0 : index
    %61 = vector.load %arg1[%c7, %c0_31] : memref<16x128xf32, #tpu.memory_space<vmem>>, vector<1x128xf32>
    %62 = vector.shape_cast %61 : vector<1x128xf32> to vector<128xf32>
    %63 = arith.mulf %62, %7 : vector<128xf32>
    %64 = arith.addf %60, %63 : vector<128xf32>
    %c1_32 = arith.constant 1 : index
    %c0_33 = arith.constant 0 : index
    %65 = vector.load %arg2[%c1_32, %c0_33] : memref<4x128xf32, #tpu.memory_space<vmem>>, vector<1x128xf32>
    %66 = vector.shape_cast %65 : vector<1x128xf32> to vector<128xf32>
    %67 = arith.mulf %66, %9 : vector<128xf32>
    %68 = arith.addf %64, %67 : vector<128xf32>
    %c1_34 = arith.constant 1 : index
    %c0_35 = arith.constant 0 : index
    %69 = vector.load %arg6[%c1_34, %c0_35] : memref<4x128xf32, #tpu.memory_space<vmem>>, vector<1x128xf32>
    %70 = vector.shape_cast %69 : vector<1x128xf32> to vector<128xf32>
    %71 = vector.shape_cast %68 : vector<128xf32> to vector<1x128xf32>
    tpu.vector_store %arg6[%c1_34, %c0_35], %71 {strides = array<i32>} : memref<4x128xf32, #tpu.memory_space<vmem>>, vector<1x128xf32>,
    %c4_36 = arith.constant 4 : index
    %c0_37 = arith.constant 0 : index
    %72 = vector.load %arg3[%c4_36, %c0_37] : memref<16x128xf32, #tpu.memory_space<vmem>>, vector<1x128xf32>
    %73 = vector.shape_cast %72 : vector<1x128xf32> to vector<128xf32>
    %74 = arith.mulf %73, %1 : vector<128xf32>
    %c5_38 = arith.constant 5 : index
    %c0_39 = arith.constant 0 : index
    %75 = vector.load %arg3[%c5_38, %c0_39] : memref<16x128xf32, #tpu.memory_space<vmem>>, vector<1x128xf32>
    %76 = vector.shape_cast %75 : vector<1x128xf32> to vector<128xf32>
    %77 = arith.mulf %76, %3 : vector<128xf32>
    %78 = arith.addf %74, %77 : vector<128xf32>
    %c6_40 = arith.constant 6 : index
    %c0_41 = arith.constant 0 : index
    %79 = vector.load %arg3[%c6_40, %c0_41] : memref<16x128xf32, #tpu.memory_space<vmem>>, vector<1x128xf32>
    %80 = vector.shape_cast %79 : vector<1x128xf32> to vector<128xf32>
    %81 = arith.mulf %80, %5 : vector<128xf32>
    %82 = arith.addf %78, %81 : vector<128xf32>
    %c7_42 = arith.constant 7 : index
    %c0_43 = arith.constant 0 : index
    %83 = vector.load %arg3[%c7_42, %c0_43] : memref<16x128xf32, #tpu.memory_space<vmem>>, vector<1x128xf32>
    %84 = vector.shape_cast %83 : vector<1x128xf32> to vector<128xf32>
    %85 = arith.mulf %84, %7 : vector<128xf32>
    %86 = arith.addf %82, %85 : vector<128xf32>
    %c1_44 = arith.constant 1 : index
    %c0_45 = arith.constant 0 : index
    %87 = vector.load %arg7[%c1_44, %c0_45] : memref<4x128xf32, #tpu.memory_space<vmem>>, vector<1x128xf32>
    %88 = vector.shape_cast %87 : vector<1x128xf32> to vector<128xf32>
    %89 = vector.shape_cast %86 : vector<128xf32> to vector<1x128xf32>
    tpu.vector_store %arg7[%c1_44, %c0_45], %89 {strides = array<i32>} : memref<4x128xf32, #tpu.memory_space<vmem>>, vector<1x128xf32>,
    %c8 = arith.constant 8 : index
    %c0_46 = arith.constant 0 : index
    %90 = vector.load %arg1[%c8, %c0_46] : memref<16x128xf32, #tpu.memory_space<vmem>>, vector<1x128xf32>
    %91 = vector.shape_cast %90 : vector<1x128xf32> to vector<128xf32>
    %92 = arith.mulf %91, %1 : vector<128xf32>
    %c9 = arith.constant 9 : index
    %c0_47 = arith.constant 0 : index
    %93 = vector.load %arg1[%c9, %c0_47] : memref<16x128xf32, #tpu.memory_space<vmem>>, vector<1x128xf32>
    %94 = vector.shape_cast %93 : vector<1x128xf32> to vector<128xf32>
    %95 = arith.mulf %94, %3 : vector<128xf32>
    %96 = arith.addf %92, %95 : vector<128xf32>
    %c10 = arith.constant 10 : index
    %c0_48 = arith.constant 0 : index
    %97 = vector.load %arg1[%c10, %c0_48] : memref<16x128xf32, #tpu.memory_space<vmem>>, vector<1x128xf32>
    %98 = vector.shape_cast %97 : vector<1x128xf32> to vector<128xf32>
    %99 = arith.mulf %98, %5 : vector<128xf32>
    %100 = arith.addf %96, %99 : vector<128xf32>
    %c11 = arith.constant 11 : index
    %c0_49 = arith.constant 0 : index
    %101 = vector.load %arg1[%c11, %c0_49] : memref<16x128xf32, #tpu.memory_space<vmem>>, vector<1x128xf32>
    %102 = vector.shape_cast %101 : vector<1x128xf32> to vector<128xf32>
    %103 = arith.mulf %102, %7 : vector<128xf32>
    %104 = arith.addf %100, %103 : vector<128xf32>
    %c2_50 = arith.constant 2 : index
    %c0_51 = arith.constant 0 : index
    %105 = vector.load %arg2[%c2_50, %c0_51] : memref<4x128xf32, #tpu.memory_space<vmem>>, vector<1x128xf32>
    %106 = vector.shape_cast %105 : vector<1x128xf32> to vector<128xf32>
    %107 = arith.mulf %106, %9 : vector<128xf32>
    %108 = arith.addf %104, %107 : vector<128xf32>
    %c2_52 = arith.constant 2 : index
    %c0_53 = arith.constant 0 : index
    %109 = vector.load %arg6[%c2_52, %c0_53] : memref<4x128xf32, #tpu.memory_space<vmem>>, vector<1x128xf32>
    %110 = vector.shape_cast %109 : vector<1x128xf32> to vector<128xf32>
    %111 = vector.shape_cast %108 : vector<128xf32> to vector<1x128xf32>
    tpu.vector_store %arg6[%c2_52, %c0_53], %111 {strides = array<i32>} : memref<4x128xf32, #tpu.memory_space<vmem>>, vector<1x128xf32>,
    %c8_54 = arith.constant 8 : index
    %c0_55 = arith.constant 0 : index
    %112 = vector.load %arg3[%c8_54, %c0_55] : memref<16x128xf32, #tpu.memory_space<vmem>>, vector<1x128xf32>
    %113 = vector.shape_cast %112 : vector<1x128xf32> to vector<128xf32>
    %114 = arith.mulf %113, %1 : vector<128xf32>
    %c9_56 = arith.constant 9 : index
    %c0_57 = arith.constant 0 : index
    %115 = vector.load %arg3[%c9_56, %c0_57] : memref<16x128xf32, #tpu.memory_space<vmem>>, vector<1x128xf32>
    %116 = vector.shape_cast %115 : vector<1x128xf32> to vector<128xf32>
    %117 = arith.mulf %116, %3 : vector<128xf32>
    %118 = arith.addf %114, %117 : vector<128xf32>
    %c10_58 = arith.constant 10 : index
    %c0_59 = arith.constant 0 : index
    %119 = vector.load %arg3[%c10_58, %c0_59] : memref<16x128xf32, #tpu.memory_space<vmem>>, vector<1x128xf32>
    %120 = vector.shape_cast %119 : vector<1x128xf32> to vector<128xf32>
    %121 = arith.mulf %120, %5 : vector<128xf32>
    %122 = arith.addf %118, %121 : vector<128xf32>
    %c11_60 = arith.constant 11 : index
    %c0_61 = arith.constant 0 : index
    %123 = vector.load %arg3[%c11_60, %c0_61] : memref<16x128xf32, #tpu.memory_space<vmem>>, vector<1x128xf32>
    %124 = vector.shape_cast %123 : vector<1x128xf32> to vector<128xf32>
    %125 = arith.mulf %124, %7 : vector<128xf32>
    %126 = arith.addf %122, %125 : vector<128xf32>
    %c2_62 = arith.constant 2 : index
    %c0_63 = arith.constant 0 : index
    %127 = vector.load %arg7[%c2_62, %c0_63] : memref<4x128xf32, #tpu.memory_space<vmem>>, vector<1x128xf32>
    %128 = vector.shape_cast %127 : vector<1x128xf32> to vector<128xf32>
    %129 = vector.shape_cast %126 : vector<128xf32> to vector<1x128xf32>
    tpu.vector_store %arg7[%c2_62, %c0_63], %129 {strides = array<i32>} : memref<4x128xf32, #tpu.memory_space<vmem>>, vector<1x128xf32>,
    %c12 = arith.constant 12 : index
    %c0_64 = arith.constant 0 : index
    %130 = vector.load %arg1[%c12, %c0_64] : memref<16x128xf32, #tpu.memory_space<vmem>>, vector<1x128xf32>
    %131 = vector.shape_cast %130 : vector<1x128xf32> to vector<128xf32>
    %132 = arith.mulf %131, %1 : vector<128xf32>
    %c13 = arith.constant 13 : index
    %c0_65 = arith.constant 0 : index
    %133 = vector.load %arg1[%c13, %c0_65] : memref<16x128xf32, #tpu.memory_space<vmem>>, vector<1x128xf32>
    %134 = vector.shape_cast %133 : vector<1x128xf32> to vector<128xf32>
    %135 = arith.mulf %134, %3 : vector<128xf32>
    %136 = arith.addf %132, %135 : vector<128xf32>
    %c14 = arith.constant 14 : index
    %c0_66 = arith.constant 0 : index
    %137 = vector.load %arg1[%c14, %c0_66] : memref<16x128xf32, #tpu.memory_space<vmem>>, vector<1x128xf32>
    %138 = vector.shape_cast %137 : vector<1x128xf32> to vector<128xf32>
    %139 = arith.mulf %138, %5 : vector<128xf32>
    %140 = arith.addf %136, %139 : vector<128xf32>
    %c15 = arith.constant 15 : index
    %c0_67 = arith.constant 0 : index
    %141 = vector.load %arg1[%c15, %c0_67] : memref<16x128xf32, #tpu.memory_space<vmem>>, vector<1x128xf32>
    %142 = vector.shape_cast %141 : vector<1x128xf32> to vector<128xf32>
    %143 = arith.mulf %142, %7 : vector<128xf32>
    %144 = arith.addf %140, %143 : vector<128xf32>
    %c3_68 = arith.constant 3 : index
    %c0_69 = arith.constant 0 : index
    %145 = vector.load %arg2[%c3_68, %c0_69] : memref<4x128xf32, #tpu.memory_space<vmem>>, vector<1x128xf32>
    %146 = vector.shape_cast %145 : vector<1x128xf32> to vector<128xf32>
    %147 = arith.mulf %146, %9 : vector<128xf32>
    %148 = arith.addf %144, %147 : vector<128xf32>
    %c3_70 = arith.constant 3 : index
    %c0_71 = arith.constant 0 : index
    %149 = vector.load %arg6[%c3_70, %c0_71] : memref<4x128xf32, #tpu.memory_space<vmem>>, vector<1x128xf32>
    %150 = vector.shape_cast %149 : vector<1x128xf32> to vector<128xf32>
    %151 = vector.shape_cast %148 : vector<128xf32> to vector<1x128xf32>
    tpu.vector_store %arg6[%c3_70, %c0_71], %151 {strides = array<i32>} : memref<4x128xf32, #tpu.memory_space<vmem>>, vector<1x128xf32>,
    %c12_72 = arith.constant 12 : index
    %c0_73 = arith.constant 0 : index
    %152 = vector.load %arg3[%c12_72, %c0_73] : memref<16x128xf32, #tpu.memory_space<vmem>>, vector<1x128xf32>
    %153 = vector.shape_cast %152 : vector<1x128xf32> to vector<128xf32>
    %154 = arith.mulf %153, %1 : vector<128xf32>
    %c13_74 = arith.constant 13 : index
    %c0_75 = arith.constant 0 : index
    %155 = vector.load %arg3[%c13_74, %c0_75] : memref<16x128xf32, #tpu.memory_space<vmem>>, vector<1x128xf32>
    %156 = vector.shape_cast %155 : vector<1x128xf32> to vector<128xf32>
    %157 = arith.mulf %156, %3 : vector<128xf32>
    %158 = arith.addf %154, %157 : vector<128xf32>
    %c14_76 = arith.constant 14 : index
    %c0_77 = arith.constant 0 : index
    %159 = vector.load %arg3[%c14_76, %c0_77] : memref<16x128xf32, #tpu.memory_space<vmem>>, vector<1x128xf32>
    %160 = vector.shape_cast %159 : vector<1x128xf32> to vector<128xf32>
    %161 = arith.mulf %160, %5 : vector<128xf32>
    %162 = arith.addf %158, %161 : vector<128xf32>
    %c15_78 = arith.constant 15 : index
    %c0_79 = arith.constant 0 : index
    %163 = vector.load %arg3[%c15_78, %c0_79] : memref<16x128xf32, #tpu.memory_space<vmem>>, vector<1x128xf32>
    %164 = vector.shape_cast %163 : vector<1x128xf32> to vector<128xf32>
    %165 = arith.mulf %164, %7 : vector<128xf32>
    %166 = arith.addf %162, %165 : vector<128xf32>
    %c3_80 = arith.constant 3 : index
    %c0_81 = arith.constant 0 : index
    %167 = vector.load %arg7[%c3_80, %c0_81] : memref<4x128xf32, #tpu.memory_space<vmem>>, vector<1x128xf32>
    %168 = vector.shape_cast %167 : vector<1x128xf32> to vector<128xf32>
    %169 = vector.shape_cast %166 : vector<128xf32> to vector<1x128xf32>
    tpu.vector_store %arg7[%c3_80, %c0_81], %169 {strides = array<i32>} : memref<4x128xf32, #tpu.memory_space<vmem>>, vector<1x128xf32>,
    return
  }
  func.func @transform_0(%arg0: i32) -> (i32, i32) {
    %c0_i32 = arith.constant 0 : i32
    %c0_i32_0 = arith.constant 0 : i32
    return %c0_i32, %arg0 : i32, i32
  }
  func.func @transform_1(%arg0: i32) -> (i32, i32) {
    %c0_i32 = arith.constant 0 : i32
    %c0_i32_0 = arith.constant 0 : i32
    return %c0_i32, %arg0 : i32, i32
  }
  func.func @transform_2(%arg0: i32) -> (i32, i32) {
    %c0_i32 = arith.constant 0 : i32
    %c0_i32_0 = arith.constant 0 : i32
    return %c0_i32, %arg0 : i32, i32
  }
  func.func @transform_3(%arg0: i32) -> (i32, i32) {
    %c0_i32 = arith.constant 0 : i32
    %c0_i32_0 = arith.constant 0 : i32
    return %c0_i32, %arg0 : i32, i32
  }
  func.func @transform_4(%arg0: i32) -> (i32, i32) {
    %c0_i32 = arith.constant 0 : i32
    %c0_i32_0 = arith.constant 0 : i32
    return %c0_i32, %arg0 : i32, i32
  }
  func.func @transform_5(%arg0: i32) -> (i32, i32) {
    %c0_i32 = arith.constant 0 : i32
    %c0_i32_0 = arith.constant 0 : i32
    return %c0_i32, %arg0 : i32, i32
  }
  func.func @transform_6(%arg0: i32) -> (i32, i32) {
    %c0_i32 = arith.constant 0 : i32
    %c0_i32_0 = arith.constant 0 : i32
    return %c0_i32, %arg0 : i32, i32
  }
}

</mosaic_0001>

<bundles_post_ra>
// kernel: tpu_custom_call.1
= control target key start
LH: loop header
LB: loop body
LE: loop exit
PB: predicated region body
PF: predicated region fallthrough
CT: control target
= control target key end

     0   :  { %12 = vsyncpa [#allocation3], 0  ;;  %s501_s0 = inlined_call_operand.hbm [shape: f32[16,128], index: 0, kind: input, shape index: {}]   ;;  %s502_s1 = inlined_call_operand.hbm [shape: f32[4,128], index: 1, kind: input, shape index: {}]   ;;  %s503_s2 = inlined_call_operand.hbm [shape: f32[16,128], index: 2, kind: input, shape index: {}]   ;;  %s504_s3 = inlined_call_operand.vmem [shape: f32[4,128], index: 3, kind: input, shape index: {}]   ;;  %s505_s4 = inlined_call_operand.vmem [shape: f32[1,128], index: 4, kind: input, shape index: {}]   ;;  %s506_s5 = inlined_call_operand.hbm [shape: f32[4,128], index: 5, kind: output, shape index: {0}]   ;;  %s507_s6 = inlined_call_operand.hbm [shape: f32[4,128], index: 6, kind: output, shape index: {1}]  }
   0x1   :  { %13 = vsyncpa [#allocation6], 0 }
   0x2   :  { %14 = vsyncpa [#allocation4], 0 }
   0x3   :  { %15 = vsyncpa [#allocation10], 0  ;;  %s331_s21 = smov [#allocation5]   ;;  %s332_s23 = smov [#allocation2]  }
   0x4   :  { %s34_s22 = sshll.u32 %s331_s21, 4  ;;  %s21_s24 = sshll.u32 %s332_s23, 4  ;;  %s35_s22 = int_to_ptr.vmem [resolvable:$true] %s34_s22  ;;  %s373_s24 = int_to_ptr.vmem [resolvable:$true] %s21_s24 }
   0x5   :  { %s213_s27 = scalar_lea.hbm %s502_s1, 64 }
   0x6   :  { %p214_p0 = scmp.ne.s32.totalorder %s502_s1, %s213_s27  ;;  %p217_p1 = scmp.lt.u32.totalorder %s213_s27, %s502_s1 }
   0x8   :  { %p219_p2 = pnand %p217_p1, %p214_p0 }
   0xa   :  { %222 = shalt.err (!%p219_p2)
}
   0xb   :  { %s223_s8 = scalar_lea.vmem %s35_s22, 64  ;;  %p228_p4 = scmp.lt.s32.totalorder %s35_s22, %s35_s22 }
   0xc   :  { %p224_p3 = scmp.ne.s32.totalorder %s35_s22, %s223_s8  ;;  %p229_p5 = scmp.lt.s32.totalorder %s223_s8, %s223_s8 }
   0xe   :  { %p230_p6 = por %p229_p5, %p228_p4 }
  0x10   :  { %p231_p7 = pnand %p230_p6, %p224_p3 }
  0x12   :  { %234 = shalt.err (!%p231_p7)
}
  0x13   :  { %37 = dma.hbm_to_vmem [thread:$0]  %s502_s1, 64, %s35_s22, [#allocation6]  }
  0x14   :  { %s235_s13 = scalar_lea.hbm %s501_s0, 256 }
  0x15   :  { %p236_p8 = scmp.ne.s32.totalorder %s501_s0, %s235_s13  ;;  %p239_p9 = scmp.lt.u32.totalorder %s235_s13, %s501_s0 }
  0x17   :  { %p241_p10 = pnand %p239_p9, %p236_p8 }
  0x19   :  { %244 = shalt.err (!%p241_p10)
}
  0x1a   :  { %s245_s18 = scalar_lea.vmem %s373_s24, 256  ;;  %p250_p12 = scmp.lt.s32.totalorder %s373_s24, %s373_s24 }
  0x1b   :  { %p246_p11 = scmp.ne.s32.totalorder %s373_s24, %s245_s18  ;;  %p251_p13 = scmp.lt.s32.totalorder %s245_s18, %s245_s18 }
  0x1d   :  { %p252_p0 = por %p251_p13, %p250_p12 }
  0x1f   :  { %p253_p1 = pnand %p252_p0, %p246_p11 }
  0x21   :  { %256 = shalt.err (!%p253_p1)
}
  0x22   :  { %s333_s1 = smov 128   ;;  %s334_s19 = smov 8  }
  0x23   :  { %27 = dma.hbm_to_vmem [thread:$0]  %s501_s0, 256, %s373_s24, [#allocation3], %s333_s1, %s333_s1, %s334_s19  }
  0x24   :  { %s335_s22 = smov [#allocation7]   ;;  %s257_s27 = scalar_lea.hbm %s503_s2, 256 }
  0x25   :  { %s43_s23 = sshll.u32 %s335_s22, 4  ;;  %p258_p2 = scmp.ne.s32.totalorder %s503_s2, %s257_s27  ;;  %s44_s23 = int_to_ptr.vmem [resolvable:$true] %s43_s23 }
  0x26   :  { %p261_p3 = scmp.lt.u32.totalorder %s257_s27, %s503_s2 }
  0x28   :  { %p263_p4 = pnand %p261_p3, %p258_p2 }
  0x2a   :  { %266 = shalt.err (!%p263_p4)
}
  0x2b   :  { %s267_s8 = scalar_lea.vmem %s44_s23, 256  ;;  %p272_p6 = scmp.lt.s32.totalorder %s44_s23, %s44_s23 }
  0x2c   :  { %p268_p5 = scmp.ne.s32.totalorder %s44_s23, %s267_s8  ;;  %p273_p7 = scmp.lt.s32.totalorder %s267_s8, %s267_s8 }
  0x2e   :  { %p274_p8 = por %p273_p7, %p272_p6 }
  0x30   :  { %p275_p9 = pnand %p274_p8, %p268_p5 }
  0x32   :  { %278 = shalt.err (!%p275_p9)
}
  0x33   :  { %49 = dma.hbm_to_vmem [thread:$0]  %s503_s2, 256, %s44_s23, [#allocation6], %s333_s1, %s333_s1, %s334_s19  }
  0x34   :  { %323 = dma.done.wait [#allocation3], 256  }
  0x35   :  { %324 = vsyncadd [#allocation3], 4294967040 }
  0x36   :  { %325 = dma.done.wait [#allocation6], 320  }
  0x37   :  { %326 = vsyncadd [#allocation6], 4294966976  ;;  %v419_v0 = vld [vmem:[%s504_s3] sm:$0x1]  ;;  %v424_v1 = vld [vmem:[%s504_s3 + $0x1] sm:$0x1] }
  0x38   :  { %v429_v2 = vld [vmem:[%s504_s3 + $0x2] sm:$0x1]  ;;  %v434_v3 = vld [vmem:[%s504_s3 + $0x3] sm:$0x1]  ;;  %v439_v4 = vld [vmem:[%s505_s4] sm:$0x1] }
  0x39   :  { %v68_v5 = vld [vmem:[#allocation2] sm:$0x1]  ;;  %v70_v7 = vld [vmem:[#allocation2 + $0x1] sm:$0x1]  ;;  %v73_v8 = vld [vmem:[#allocation2 + $0x2] sm:$0x1] }
  0x3a   :  { %v69_v6 = vmul.f32 %v68_v5, %v419_v0  ;;  %v76_v9 = vld [vmem:[#allocation2 + $0x3] sm:$0x1]  ;;  %v71_v10 = vmul.f32 %v70_v7, %v424_v1  ;;  %v74_v11 = vmul.f32 %v73_v8, %v429_v2  ;;  %v79_v12 = vld [vmem:[#allocation5] sm:$0x1]  ;;  %v83_v13 = vld [vmem:[#allocation7] sm:$0x1] }
  0x3b   :  { %v85_v14 = vld [vmem:[#allocation7 + $0x1] sm:$0x1]  ;;  %v77_v15 = vmul.f32 %v76_v9, %v434_v3  ;;  %v80_v16 = vmul.f32 %v79_v12, %v439_v4  ;;  %v84_v17 = vmul.f32 %v83_v13, %v419_v0  ;;  %v88_v19 = vld [vmem:[#allocation7 + $0x2] sm:$0x1]  ;;  %v91_v20 = vld [vmem:[#allocation7 + $0x3] sm:$0x1] }
  0x3c   :  { %v86_v18 = vmul.f32 %v85_v14, %v424_v1  ;;  %v95_v21 = vld [vmem:[#allocation2 + $0x4] sm:$0x1]  ;;  %v72_v22 = vadd.f32 %v71_v10, %v69_v6  ;;  %v89_v23 = vmul.f32 %v88_v19, %v429_v2  ;;  %v92_v24 = vmul.f32 %v91_v20, %v434_v3  ;;  %v97_v26 = vld [vmem:[#allocation2 + $0x5] sm:$0x1]  ;;  %v100_v27 = vld [vmem:[#allocation2 + $0x6] sm:$0x1] }
  0x3d   :  { %v96_v25 = vmul.f32 %v95_v21, %v419_v0  ;;  %v103_v28 = vld [vmem:[#allocation2 + $0x7] sm:$0x1]  ;;  %v98_v30 = vmul.f32 %v97_v26, %v424_v1  ;;  %v101_v31 = vmul.f32 %v100_v27, %v429_v2  ;;  %v106_v33 = vld [vmem:[#allocation5 + $0x1] sm:$0x1]  ;;  %v110_v34 = vld [vmem:[#allocation7 + $0x4] sm:$0x1] }
  0x3e   :  { %v87_v29 = vadd.f32 %v86_v18, %v84_v17  ;;  %v104_v32 = vmul.f32 %v103_v28, %v434_v3  ;;  %v112_v35 = vld [vmem:[#allocation7 + $0x5] sm:$0x1]  ;;  %v75_v36 = vadd.f32 %v74_v11, %v72_v22  ;;  %v107_v37 = vmul.f32 %v106_v33, %v439_v4  ;;  %v115_v40 = vld [vmem:[#allocation7 + $0x6] sm:$0x1]  ;;  %v118_v41 = vld [vmem:[#allocation7 + $0x7] sm:$0x1] }
  0x3f   :  { %v111_v38 = vmul.f32 %v110_v34, %v419_v0  ;;  %v113_v39 = vmul.f32 %v112_v35, %v424_v1  ;;  %v122_v42 = vld [vmem:[#allocation2 + $0x8] sm:$0x1]  ;;  %v99_v44 = vadd.f32 %v98_v30, %v96_v25  ;;  %v116_v45 = vmul.f32 %v115_v40, %v429_v2  ;;  %v124_v47 = vld [vmem:[#allocation2 + $0x9] sm:$0x1]  ;;  %v127_v48 = vld [vmem:[#allocation2 + $0xa] sm:$0x1] }
  0x40   :  { %v90_v43 = vadd.f32 %v89_v23, %v87_v29  ;;  %v119_v46 = vmul.f32 %v118_v41, %v434_v3  ;;  %v130_v49 = vld [vmem:[#allocation2 + $0xb] sm:$0x1]  ;;  %v78_v50 = vadd.f32 %v77_v15, %v75_v36  ;;  %v123_v52 = vmul.f32 %v122_v42, %v419_v0  ;;  %v133_v54 = vld [vmem:[#allocation5 + $0x2] sm:$0x1]  ;;  %v137_v55 = vld [vmem:[#allocation7 + $0x8] sm:$0x1] }
  0x41   :  { %v114_v51 = vadd.f32 %v113_v39, %v111_v38  ;;  %v125_v53 = vmul.f32 %v124_v47, %v424_v1  ;;  %v139_v56 = vld [vmem:[#allocation7 + $0x9] sm:$0x1]  ;;  %v102_v58 = vadd.f32 %v101_v31, %v99_v44  ;;  %v128_v59 = vmul.f32 %v127_v48, %v429_v2  ;;  %v142_v61 = vld [vmem:[#allocation7 + $0xa] sm:$0x1]  ;;  %v145_v62 = vld [vmem:[#allocation7 + $0xb] sm:$0x1] }
  0x42   :  { %v93_v57 = vadd.f32 %v92_v24, %v90_v43  ;;  %v131_v60 = vmul.f32 %v130_v49, %v434_v3  ;;  %v149_v63 = vld [vmem:[#allocation2 + $0xc] sm:$0x1]  ;;  %v81_v5 = vadd.f32 %v80_v16, %v78_v50  ;;  %v134_v8 = vmul.f32 %v133_v54, %v439_v4  ;;  %v151_v9 = vld [vmem:[#allocation2 + $0xd] sm:$0x1]  ;;  %v154_v10 = vld [vmem:[#allocation2 + $0xe] sm:$0x1] }
  0x43   :  { %v117_v6 = vadd.f32 %v116_v45, %v114_v51  ;;  %v126_v7 = vadd.f32 %v125_v53, %v123_v52  ;;  %v105_v11 = vadd.f32 %v104_v32, %v102_v58  ;;  %v138_v12 = vmul.f32 %v137_v55, %v419_v0  ;;  %v157_v15 = vld [vmem:[#allocation2 + $0xf] sm:$0x1]  ;;  %v164_v17 = vld [vmem:[#allocation7 + $0xc] sm:$0x1]  ;;  %v166_v21 = vld [vmem:[#allocation7 + $0xd] sm:$0x1] }
  0x44   :  { %94 = vst [vmem:[#allocation9] sm:$0x1] %v93_v57  ;;  %v140_v13 = vmul.f32 %v139_v56, %v424_v1  ;;  %v143_v14 = vmul.f32 %v142_v61, %v429_v2  ;;  %82 = vst [vmem:[#allocation8] sm:$0x1] %v81_v5  ;;  %v146_v16 = vmul.f32 %v145_v62, %v434_v3  ;;  %v169_v22 = vld [vmem:[#allocation7 + $0xe] sm:$0x1] }
  0x45   :  { %v120_v18 = vadd.f32 %v119_v46, %v117_v6  ;;  %v129_v19 = vadd.f32 %v128_v59, %v126_v7  ;;  %v150_v20 = vmul.f32 %v149_v63, %v419_v0  ;;  %v108_v23 = vadd.f32 %v107_v37, %v105_v11  ;;  %v160_v27 = vld [vmem:[#allocation5 + $0x3] sm:$0x1]  ;;  %v172_v31 = vld [vmem:[#allocation7 + $0xf] sm:$0x1]  ;;  %s336_s3 = smov [#allocation8]   ;;  %s337_s18 = smov [#allocation9]  }
  0x46   :  { %v141_v24 = vadd.f32 %v140_v13, %v138_v12  ;;  %v152_v25 = vmul.f32 %v151_v9, %v424_v1  ;;  %v155_v26 = vmul.f32 %v154_v10, %v429_v2  ;;  %v158_v29 = vmul.f32 %v157_v15, %v434_v3  ;;  %s182_s4 = sshll.u32 %s336_s3, 4  ;;  %s192_s1 = sshll.u32 %s337_s18, 4  ;;  %s183_s4 = int_to_ptr.vmem [resolvable:$true] %s182_s4  ;;  %s193_s1 = int_to_ptr.vmem [resolvable:$true] %s192_s1 }
  0x47   :  { %121 = vst [vmem:[#allocation9 + $0x1] sm:$0x1] %v120_v18  ;;  %v132_v28 = vadd.f32 %v131_v60, %v129_v19  ;;  %v165_v30 = vmul.f32 %v164_v17, %v419_v0  ;;  %109 = vst [vmem:[#allocation8 + $0x1] sm:$0x1] %v108_v23  ;;  %v167_v34 = vmul.f32 %v166_v21, %v424_v1  ;;  %s279_s19 = scalar_lea.vmem %s183_s4, 64  ;;  %p284_p11 = scmp.lt.s32.totalorder %s183_s4, %s183_s4 }
  0x48   :  { %v144_v32 = vadd.f32 %v143_v14, %v141_v24  ;;  %v153_v33 = vadd.f32 %v152_v25, %v150_v20  ;;  %v170_v35 = vmul.f32 %v169_v22, %v429_v2  ;;  %v161_v37 = vmul.f32 %v160_v27, %v439_v4  ;;  %p280_p10 = scmp.ne.s32.totalorder %s183_s4, %s279_s19  ;;  %p285_p12 = scmp.lt.s32.totalorder %s279_s19, %s279_s19 }
  0x49   :  { %v135_v36 = vadd.f32 %v134_v8, %v132_v28  ;;  %v168_v40 = vadd.f32 %v167_v34, %v165_v30  ;;  %v173_v41 = vmul.f32 %v172_v31, %v434_v3 }
  0x4a   :  { %v147_v38 = vadd.f32 %v146_v16, %v144_v32  ;;  %v156_v39 = vadd.f32 %v155_v26, %v153_v33  ;;  %p286_p13 = por %p285_p12, %p284_p11 }
  0x4b   :  { %136 = vst [vmem:[#allocation8 + $0x2] sm:$0x1] %v135_v36  ;;  %v171_v42 = vadd.f32 %v170_v35, %v168_v40 }
  0x4c   :  { %148 = vst [vmem:[#allocation9 + $0x2] sm:$0x1] %v147_v38  ;;  %v159_v0 = vadd.f32 %v158_v29, %v156_v39  ;;  %p287_p0 = pnand %p286_p13, %p280_p10 }
  0x4d   :  { %v174_v1 = vadd.f32 %v173_v41, %v171_v42 }
  0x4e   :  { %v162_v43 = vadd.f32 %v161_v37, %v159_v0 }
  0x4f   :  { %175 = vst [vmem:[#allocation9 + $0x3] sm:$0x1] %v174_v1 }
  0x50   :  { %163 = vst [vmem:[#allocation8 + $0x3] sm:$0x1] %v162_v43 }
  0x51   :  { %290 = shalt.err (!%p287_p0)
}
  0x52   :  { %s291_s22 = scalar_lea.hbm %s506_s5, 64 }
  0x53   :  { %p292_p1 = scmp.ne.s32.totalorder %s506_s5, %s291_s22  ;;  %p295_p2 = scmp.lt.u32.totalorder %s291_s22, %s506_s5 }
  0x55   :  { %p297_p3 = pnand %p295_p2, %p292_p1 }
  0x57   :  { %300 = shalt.err (!%p297_p3)
}
  0x58   :  { %185 = dma.vmem_to_hbm [thread:$0]  %s183_s4, 64, %s506_s5, [#allocation4]  }
  0x59   :  { %s301_s30 = scalar_lea.vmem %s193_s1, 64  ;;  %p306_p5 = scmp.lt.s32.totalorder %s193_s1, %s193_s1 }
  0x5a   :  { %p302_p4 = scmp.ne.s32.totalorder %s193_s1, %s301_s30  ;;  %p307_p6 = scmp.lt.s32.totalorder %s301_s30, %s301_s30 }
  0x5c   :  { %p308_p7 = por %p307_p6, %p306_p5 }
  0x5e   :  { %p309_p8 = pnand %p308_p7, %p302_p4 }
  0x60   :  { %312 = shalt.err (!%p309_p8)
}
  0x61   :  { %s313_s0 = scalar_lea.hbm %s507_s6, 64 }
  0x62   :  { %p314_p9 = scmp.ne.s32.totalorder %s507_s6, %s313_s0  ;;  %p317_p10 = scmp.lt.u32.totalorder %s313_s0, %s507_s6 }
  0x64   :  { %p319_p11 = pnand %p317_p10, %p314_p9 }
  0x66   :  { %322 = shalt.err (!%p319_p11)
}
  0x67   :  { %195 = dma.vmem_to_hbm [thread:$0]  %s193_s1, 64, %s507_s6, [#allocation10]  }
  0x68   :  { %327 = dma.done.wait [#allocation4], 64  }
  0x69   :  { %328 = vsyncadd [#allocation4], 4294967232 }
  0x6a   :  { %329 = dma.done.wait [#allocation10], 64  }
  0x6b   :  { %330 = vsyncadd [#allocation10], 4294967232 }
  0x6c   :  { %202 = vsyncpa [#allocation3], 1 }
  0x6d   :  { %203 = vsyncpa [#allocation6], 1 }
  0x6e   :  { %204 = vsyncpa [#allocation4], 1 }
  0x6f   :  { %205 = vsyncpa [#allocation10], 1 }

</bundles_post_ra>
